<compile_context>
chip_gen: v7x
topology: tpu7x:2x2x1
jax: 0.10.0
libtpu: 0.0.40
codegen_flags: <defaults>
</compile_context>

<pallas_src>
import functools

import jax
import jax.numpy as jnp
from jax.experimental import pallas as pl
from jax.experimental.pallas import tpu as pltpu


def _round_up(x, m):
    return ((x + m - 1) // m) * m


def _glu_kernel(x_ref, w_ref, b_ref, o_ref, *, d_out_p):
    # x_ref: (TILE_M, d_in)        compute dtype (f32 or bf16)
    # w_ref: (d_in, 2*d_out_p)     compute dtype, fused [W_A | W_B]
    # b_ref: (1, 2*d_out_p)        f32, fused [b_A | b_B]
    # o_ref: (TILE_M, d_out_p)     output dtype
    ab = jnp.dot(x_ref[...], w_ref[...], preferred_element_type=jnp.float32)
    ab = ab + b_ref[...]                      # f32 bias add
    a = ab[:, :d_out_p]                       # 128-aligned lane slices
    b = ab[:, d_out_p:]
    # dropout(p=0.0) == identity; gate math stays in f32 (VPU fast path on v5e).
    o_ref[...] = (a * jax.nn.sigmoid(b)).astype(o_ref.dtype)


def glu_block(x, w_a, b_a, w_b, b_b, *, compute_dtype=None, tile_m=512):
    """x: (..., d_in); w_*: (d_in, d_out); b_*: (d_out,).

    compute_dtype: optional dtype (e.g. jnp.bfloat16) for the matmul inputs;
                   accumulation and gate math remain f32.
    """
    *lead, d_in = x.shape
    d_out = w_a.shape[1]
    out_dtype = x.dtype
    cdt = compute_dtype if compute_dtype is not None else x.dtype

    m = 1
    for s in lead:
        m *= s

    # Lane-dense output: pad d_out to a multiple of 128.
    d_out_p = _round_up(d_out, 128)
    # Row tile: multiple of 16 (valid for both f32 and bf16 sublane packing).
    tm = min(int(tile_m), _round_up(max(m, 1), 16))
    m_pad = _round_up(m, tm)

    # --- operand prep (plain JAX glue) -------------------------------------
    x2 = x.reshape(m, d_in)
    if m_pad != m:
        x2 = jnp.pad(x2, ((0, m_pad - m), (0, 0)))
    x2 = x2.astype(cdt)

    def _pad_w(w):
        return jnp.pad(w, ((0, 0), (0, d_out_p - d_out))) if d_out_p != d_out else w

    def _pad_b(b):
        return jnp.pad(b, (0, d_out_p - d_out)) if d_out_p != d_out else b

    w_ab = jnp.concatenate([_pad_w(w_a), _pad_w(w_b)], axis=1).astype(cdt)
    b_ab = (
        jnp.concatenate([_pad_b(b_a), _pad_b(b_b)])
        .reshape(1, 2 * d_out_p)
        .astype(jnp.float32)
    )

    grid = (m_pad // tm,)

    # --- VMEM budget / cost hint -------------------------------------------
    cdt_bytes = jnp.dtype(cdt).itemsize
    out_bytes = jnp.dtype(out_dtype).itemsize
    need = (
        2 * tm * d_in * cdt_bytes            # double-buffered x tiles
        + 2 * tm * d_out_p * out_bytes       # double-buffered out tiles
        + 2 * d_in * 2 * d_out_p * cdt_bytes # resident fused weights
        + 2 * 2 * d_out_p * 4                # bias
        + 3 * tm * 2 * d_out_p * 4           # f32 intermediates
    )
    vmem_limit = int(min(max(2 * need, 32 << 20), 64 << 20))  # v7x-safe cap

    cost = pl.CostEstimate(
        flops=4 * m_pad * d_in * d_out_p,          # two fused matmuls
        transcendentals=m_pad * d_out_p,           # sigmoid
        bytes_accessed=(
            m_pad * d_in * cdt_bytes
            + d_in * 2 * d_out_p * cdt_bytes
            + 2 * d_out_p * 4
            + m_pad * d_out_p * out_bytes
        ),
    )

    out = pl.pallas_call(
        functools.partial(_glu_kernel, d_out_p=d_out_p),
        out_shape=jax.ShapeDtypeStruct((m_pad, d_out_p), out_dtype),
        grid_spec=pltpu.PrefetchScalarGridSpec(
            num_scalar_prefetch=0,
            grid=grid,
            in_specs=[
                pl.BlockSpec((tm, d_in), lambda i: (i, 0)),            # x tile
                pl.BlockSpec((d_in, 2 * d_out_p), lambda i: (0, 0)),   # weights (resident)
                pl.BlockSpec((1, 2 * d_out_p), lambda i: (0, 0)),      # bias   (resident)
            ],
            out_specs=pl.BlockSpec((tm, d_out_p), lambda i: (i, 0)),
        ),
        compiler_params=pltpu.CompilerParams(
            dimension_semantics=("parallel",),     # megacore-shardable M axis
            vmem_limit_bytes=vmem_limit,
        ),
        cost_estimate=cost,
    )(x2, w_ab, b_ab)

    out = out[:m, :d_out]
    return out.reshape(*lead, d_out)


def init_params(key, d_in, d_out, dtype=jnp.float32):
    # nn.Linear default init: U(-1/sqrt(d_in), 1/sqrt(d_in)).
    k1, k2, k3, k4 = jax.random.split(key, 4)
    bound = 1.0 / (d_in ** 0.5)
    w_a = jax.random.uniform(k1, (d_in, d_out), dtype, -bound, bound)
    b_a = jax.random.uniform(k2, (d_out,), dtype, -bound, bound)
    w_b = jax.random.uniform(k3, (d_in, d_out), dtype, -bound, bound)
    b_b = jax.random.uniform(k4, (d_out,), dtype, -bound, bound)
    return w_a, b_a, w_b, b_b


def _reference(x, w_a, b_a, w_b, b_b):
    return (x @ w_a + b_a) * jax.nn.sigmoid(x @ w_b + b_b)


if __name__ == "__main__":
    key = jax.random.PRNGKey(0)
    kx, kp, kx2, kp2 = jax.random.split(key, 4)

    # --- test 1: module-sized shapes, f32 path -----------------------------
    batch, seq, d_in, d_out = 2, 8, 32, 32
    x = jax.random.normal(kx, (batch, seq, d_in), jnp.float32)
    w_a, b_a, w_b, b_b = init_params(kp, d_in, d_out)
    ref = _reference(x, w_a, b_a, w_b, b_b)

    out = jax.block_until_ready(glu_block(x, w_a, b_a, w_b, b_b))
    assert out.shape == (batch, seq, d_out)
    assert jnp.allclose(out, ref, atol=1e-5, rtol=1e-5)

    # bf16 matmul inputs, f32 accumulation + f32 gate math (loose tolerance).
    out_bf16 = jax.block_until_ready(
        glu_block(x, w_a, b_a, w_b, b_b, compute_dtype=jnp.bfloat16)
    )
    assert jnp.allclose(out_bf16, ref, atol=5e-2, rtol=5e-2)

    # --- test 2: ragged M + multiple grid steps + unaligned d_out ----------
    b2, s2, di2, do2 = 3, 50, 48, 40          # m = 150 (ragged), d_out not 128-aligned
    x2 = jax.random.normal(kx2, (b2, s2, di2), jnp.float32)
    wa2, ba2, wb2, bb2 = init_params(kp2, di2, do2)
    ref2 = _reference(x2, wa2, ba2, wb2, bb2)

    out2 = jax.block_until_ready(glu_block(x2, wa2, ba2, wb2, bb2, tile_m=64))
    assert out2.shape == (b2, s2, do2)
    assert jnp.allclose(out2, ref2, atol=1e-5, rtol=1e-5)

    print("KERNEL_OK")
</pallas_src>

<mosaic_0001>
module attributes {stable_mosaic.version = 11 : i64} {
  func.func @_glu_kernel(%arg0: i32, %arg1: memref<16x32xf32, #tpu.memory_space<vmem>>, %arg2: memref<32x256xf32, #tpu.memory_space<vmem>>, %arg3: memref<1x256xf32, #tpu.memory_space<vmem>>, %arg4: memref<16x128xf32, #tpu.memory_space<vmem>>) attributes {dimension_semantics = [#tpu.dimension_semantics<parallel>], iteration_bounds = array<i64: 1>, scalar_prefetch = 0 : i64, scratch_operands = 0 : i64, tpu.core_type = #tpu.core_type<tc>, window_params = [{transform_indices = @transform_0, window_bounds = array<i64: 16, 32>}, {pipeline_mode = #tpu.pipeline_mode<synchronous>, transform_indices = @transform_1, window_bounds = array<i64: 32, 256>}, {pipeline_mode = #tpu.pipeline_mode<synchronous>, transform_indices = @transform_2, window_bounds = array<i64: 1, 256>}, {transform_indices = @transform_3, window_bounds = array<i64: 16, 128>}]} {
    %c0 = arith.constant 0 : index
    %c0_0 = arith.constant 0 : index
    %0 = vector.load %arg1[%c0, %c0_0] : memref<16x32xf32, #tpu.memory_space<vmem>>, vector<16x32xf32>
    %c0_1 = arith.constant 0 : index
    %c0_2 = arith.constant 0 : index
    %1 = vector.load %arg2[%c0_1, %c0_2] : memref<32x256xf32, #tpu.memory_space<vmem>>, vector<32x256xf32>
    %cst = arith.constant dense<0.000000e+00> : vector<16x256xf32>
    %2 = tpu.matmul %0, %1, %cst {dimension_numbers = #tpu.dot_dimension_numbers<[1], [0], [0], [1], [0, 0, 1, 1], [], []>} : vector<16x32xf32>, vector<32x256xf32>, vector<16x256xf32> -> vector<16x256xf32>
    %c0_3 = arith.constant 0 : index
    %c0_4 = arith.constant 0 : index
    %3 = vector.load %arg3[%c0_3, %c0_4] : memref<1x256xf32, #tpu.memory_space<vmem>>, vector<1x256xf32>
    %4 = vector.broadcast %3 : vector<1x256xf32> to vector<16x256xf32>
    %5 = arith.addf %2, %4 : vector<16x256xf32>
    %6 = vector.extract_strided_slice %5 {offsets = [0, 0], sizes = [16, 128], strides = [1, 1]} : vector<16x256xf32> to vector<16x128xf32>
    %7 = vector.extract_strided_slice %5 {offsets = [0, 128], sizes = [16, 128], strides = [1, 1]} : vector<16x256xf32> to vector<16x128xf32>
    %8 = arith.negf %7 : vector<16x128xf32>
    %9 = math.exp %8 : vector<16x128xf32>
    %cst_5 = arith.constant 1.000000e+00 : f32
    %10 = vector.broadcast %cst_5 : f32 to vector<16x128xf32>
    %11 = arith.addf %10, %9 : vector<16x128xf32>
    %12 = arith.divf %10, %11 : vector<16x128xf32>
    %13 = arith.mulf %6, %12 : vector<16x128xf32>
    %c0_6 = arith.constant 0 : index
    %c0_7 = arith.constant 0 : index
    %14 = vector.load %arg4[%c0_6, %c0_7] : memref<16x128xf32, #tpu.memory_space<vmem>>, vector<16x128xf32>
    tpu.vector_store %arg4[%c0_6, %c0_7], %13 {strides = array<i32>} : memref<16x128xf32, #tpu.memory_space<vmem>>, vector<16x128xf32>,
    return
  }
  func.func @transform_0(%arg0: i32) -> (i32, i32) {
    %c0_i32 = arith.constant 0 : i32
    %c0_i32_0 = arith.constant 0 : i32
    return %arg0, %c0_i32 : i32, i32
  }
  func.func @transform_1(%arg0: i32) -> (i32, i32) {
    %c0_i32 = arith.constant 0 : i32
    %c0_i32_0 = arith.constant 0 : i32
    %c0_i32_1 = arith.constant 0 : i32
    return %c0_i32, %c0_i32_0 : i32, i32
  }
  func.func @transform_2(%arg0: i32) -> (i32, i32) {
    %c0_i32 = arith.constant 0 : i32
    %c0_i32_0 = arith.constant 0 : i32
    %c0_i32_1 = arith.constant 0 : i32
    return %c0_i32, %c0_i32_0 : i32, i32
  }
  func.func @transform_3(%arg0: i32) -> (i32, i32) {
    %c0_i32 = arith.constant 0 : i32
    %c0_i32_0 = arith.constant 0 : i32
    return %arg0, %c0_i32 : i32, i32
  }
}

</mosaic_0001>

<bundles_post_ra>
// kernel: tpu_custom_call.1
= control target key start
LH: loop header
LB: loop body
LE: loop exit
PB: predicated region body
PF: predicated region fallthrough
CT: control target
= control target key end

     0   :  { %8 = vsyncpa [#allocation3], 0  ;;  %s360_s0 = inlined_call_operand.hbm [shape: f32[16,32], index: 0, kind: input, shape index: {}]   ;;  %s361_s1 = inlined_call_operand.hbm [shape: f32[32,256], index: 1, kind: input, shape index: {}]   ;;  %s362_s2 = inlined_call_operand.vmem [shape: f32[1,256], index: 2, kind: input, shape index: {}]   ;;  %s363_s3 = inlined_call_operand.hbm [shape: f32[16,128], index: 3, kind: output, shape index: {}]  }
   0x1   :  { %9 = vsyncpa [#allocation6], 0 }
   0x2   :  { %10 = vsyncpa [#allocation4], 0  ;;  %s287_s12 = smov [#allocation2]   ;;  %s215_s16 = scalar_lea.hbm %s360_s0, 256 }
   0x3   :  { %s16_s13 = sshll.u32 %s287_s12, 4  ;;  %p216_p0 = scmp.ne.s32.totalorder %s360_s0, %s215_s16  ;;  %s17_s13 = int_to_ptr.vmem [resolvable:$true] %s16_s13 }
   0x4   :  { %p219_p1 = scmp.lt.u32.totalorder %s215_s16, %s360_s0 }
   0x6   :  { %p221_p2 = pnand %p219_p1, %p216_p0 }
   0x8   :  { %224 = shalt.err (!%p221_p2)
}
   0x9   :  { %s225_s21 = scalar_lea.vmem %s17_s13, 256  ;;  %p230_p4 = scmp.lt.s32.totalorder %s17_s13, %s17_s13 }
   0xa   :  { %p226_p3 = scmp.ne.s32.totalorder %s17_s13, %s225_s21  ;;  %p231_p5 = scmp.lt.s32.totalorder %s225_s21, %s225_s21 }
   0xc   :  { %p232_p6 = por %p231_p5, %p230_p4 }
   0xe   :  { %p233_p7 = pnand %p232_p6, %p226_p3 }
  0x10   :  { %236 = shalt.err (!%p233_p7)
}
  0x11   :  { %s288_s22 = smov 128   ;;  %s289_s23 = smov 8  }
  0x12   :  { %22 = dma.hbm_to_vmem [thread:$0]  %s360_s0, 256, %s17_s13, [#allocation3], %s288_s22, %s288_s22, %s289_s23  }
  0x13   :  { %s290_s26 = smov [#allocation5]   ;;  %s237_s30 = scalar_lea.hbm %s361_s1, 1024 }
  0x14   :  { %s28_s27 = sshll.u32 %s290_s26, 4  ;;  %p238_p8 = scmp.ne.s32.totalorder %s361_s1, %s237_s30  ;;  %s29_s27 = int_to_ptr.vmem [resolvable:$true] %s28_s27 }
  0x15   :  { %p241_p9 = scmp.lt.u32.totalorder %s237_s30, %s361_s1 }
  0x17   :  { %p243_p10 = pnand %p241_p9, %p238_p8 }
  0x19   :  { %246 = shalt.err (!%p243_p10)
}
  0x1a   :  { %s247_s8 = scalar_lea.vmem %s29_s27, 1024  ;;  %p252_p12 = scmp.lt.s32.totalorder %s29_s27, %s29_s27 }
  0x1b   :  { %p248_p11 = scmp.ne.s32.totalorder %s29_s27, %s247_s8  ;;  %p253_p13 = scmp.lt.s32.totalorder %s247_s8, %s247_s8 }
  0x1d   :  { %p254_p0 = por %p253_p13, %p252_p12 }
  0x1f   :  { %p255_p1 = pnand %p254_p0, %p248_p11 }
  0x21   :  { %258 = shalt.err (!%p255_p1)
}
  0x22   :  { %s291_s0 = smov 256   ;;  %s292_s9 = smov 16  }
  0x23   :  { %34 = dma.hbm_to_vmem [thread:$0]  %s361_s1, 1024, %s29_s27, [#allocation6], %s291_s0, %s291_s0, %s292_s9  }
  0x24   :  { %281 = dma.done.wait [#allocation3], 256  }
  0x25   :  { %282 = vsyncadd [#allocation3], 4294967040 }
  0x26   :  { %283 = dma.done.wait [#allocation6], 1024  }
  0x27   :  { %284 = vsyncadd [#allocation6], 4294966272  ;;  %v293_v0 = vmov 0.0   ;;  %v46_v1 = vld [vmem:[#allocation5 + $0x8] sm:$0xff]  ;;  %v48_v2 = vld [vmem:[#allocation5 + $0x18] sm:$0xff]  ;;  %vm65_vm0 = vcmask 261120   ;;  %v55_v15 = vlaneseq }
  0x28   :  { %136 = vmatprep.mubr.f32.mxu0 %v293_v0  ;;  %142 = vmatprep.mubr.f32.mxu1 %v293_v0  ;;  %v45_v3 = vld [vmem:[#allocation5] sm:$0xff]  ;;  %v187_v4 = vpack.c.bf16 %v48_v2, %v46_v1  ;;  %v47_v5 = vld [vmem:[#allocation5 + $0x10] sm:$0xff]  ;;  %v50_v6 = vld [vmem:[#allocation5 + $0x28] sm:$0xff] }
  0x29   :  { %v52_v7 = vld [vmem:[#allocation5 + $0x38] sm:$0xff]  ;;  %v189_v8 = vpack.c.bf16 %v47_v5, %v45_v3  ;;  %v49_v10 = vld [vmem:[#allocation5 + $0x20] sm:$0xff]  ;;  %v51_v11 = vld [vmem:[#allocation5 + $0x30] sm:$0xff]  ;;  %v56_v16 = vshrl.u32 %v55_v15, 7 }
  0x2a   :  { %v191_v9 = vpack.c.bf16 %v52_v7, %v50_v6  ;;  %188 = vmatprep.subr.bf16.mxu0 %v187_v4  ;;  %195 = vmatprep.subr.bf16.mxu1 %v187_v4  ;;  %v193_v12 = vpack.c.bf16 %v51_v11, %v49_v10  ;;  %v43_v13 = vld [vmem:[#allocation2] sm:$0xff]  ;;  %v44_v14 = vld [vmem:[#allocation2 + $0x8] sm:$0xff] }
  0x2b   :  { %190 = vmatpush1.bf16.msra.mxu0 %v189_v8  ;;  %197 = vmatpush1.bf16.msra.mxu1 %v189_v8  ;;  %v61_v17 = vsub.s32 1, %v56_v16  ;;  %v53_v18 = vld [vmem:[%s362_s2] sm:$0x3]  ;;  %v57_v32 = vsub.s32 0, %v56_v16  ;;  %s294_s2 = smov [#allocation7]  }
  0x2c   :  { %192 = vmatprep.subr.bf16.mxu0 %v191_v9  ;;  %196 = vmatprep.subr.bf16.mxu1 %v191_v9  ;;  %s170_s13 = sshll.u32 %s294_s2, 4  ;;  %s171_s13 = int_to_ptr.vmem [resolvable:$true] %s170_s13 }
  0x2d   :  { %v62_v19 = vrot.slane %v53_v18, %v61_v17  ;;  %v58_v33 = vrot.slane %v53_v18, %v57_v32  ;;  %s259_s14 = scalar_lea.vmem %s171_s13, 256  ;;  %p264_p3 = scmp.lt.s32.totalorder %s171_s13, %s171_s13 }
  0x2e   :  { %p260_p2 = scmp.ne.s32.totalorder %s171_s13, %s259_s14  ;;  %p265_p4 = scmp.lt.s32.totalorder %s259_s14, %s259_s14 }
  0x2f   :  { %194 = vmatpush1.bf16.msra.mxu0 %v193_v12  ;;  %198 = vmatpush1.bf16.msra.mxu1 %v193_v12 }
  0x30   :  { %p266_p5 = por %p265_p4, %p264_p3 }
  0x32   :  { %183 = vmatmul.mubr.msk.f32.vlgmr.msra.gmra.mrb[0].mxu0 %vm65_vm0, %v43_v13  ;;  %184 = vmatmul.mubr.msk.f32.vlgmr.msra.gmra.mrb[0].mxu1 %vm65_vm0, %v44_v14  ;;  %p267_p6 = pnand %p266_p5, %p260_p2 }
 0x105   :  { %v138_v20 = vpop.f32.mrb[0].mxu0  ;;  %v144_v21 = vpop.f32.mrb[0].mxu1 }
 0x106   :  { %v140_v22 = vpop.f32.mrb[1].mxu0  ;;  %v146_v23 = vpop.f32.mrb[1].mxu1  ;;  %v139_v34 = vadd.f32 %v138_v20, %v58_v33  ;;  %v145_v36 = vadd.f32 %v144_v21, %v58_v33 }
 0x107   :  { %v141_v24 = vadd.f32 %v140_v22, %v62_v19  ;;  %v147_v25 = vadd.f32 %v146_v23, %v62_v19 }
 0x109   :  { %v185_v26 = vmul.f32 -1.442695, %v141_v24  ;;  %v186_v27 = vmul.f32 -1.442695, %v147_v25 }
 0x10b   :  { %207 = vpow2.f32 %v185_v26 }
 0x10c   :  { %209 = vpow2.f32 %v186_v27 }
 0x115   :  { %v208_v28 = vpop.eup %207 }
 0x116   :  { %v210_v29 = vpop.eup %209  ;;  %v155_v30 = vadd.f32 1.0, %v208_v28 }
 0x117   :  { %v156_v31 = vadd.f32 1.0, %v210_v29 }
 0x118   :  { %211 = vrcp.f32 %v155_v30 }
 0x119   :  { %213 = vrcp.f32 %v156_v31 }
 0x122   :  { %v212_v35 = vpop.eup %211 }
 0x123   :  { %v214_v37 = vpop.eup %213  ;;  %v161_v38 = vmul.f32 %v212_v35, %v139_v34 }
 0x124   :  { %v162_v39 = vmul.f32 %v214_v37, %v145_v36 }
 0x125   :  { %163 = vst [vmem:[#allocation7] sm:$0xff] %v161_v38 }
 0x126   :  { %164 = vst [vmem:[#allocation7 + $0x8] sm:$0xff] %v162_v39 }
 0x127   :  { %270 = shalt.err (!%p267_p6)
}
 0x128   :  { %s271_s17 = scalar_lea.hbm %s363_s3, 256 }
 0x129   :  { %p272_p7 = scmp.ne.s32.totalorder %s363_s3, %s271_s17  ;;  %p275_p8 = scmp.lt.u32.totalorder %s271_s17, %s363_s3 }
 0x12b   :  { %p277_p9 = pnand %p275_p8, %p272_p7 }
 0x12d   :  { %280 = shalt.err (!%p277_p9)
}
 0x12e   :  { %176 = dma.vmem_to_hbm [thread:$0]  %s171_s13, 256, %s363_s3, [#allocation4], %s288_s22, %s288_s22, %s289_s23  }
 0x12f   :  { %285 = dma.done.wait [#allocation4], 256  }
 0x130   :  { %286 = vsyncadd [#allocation4], 4294967040 }
 0x131   :  { %180 = vsyncpa [#allocation3], 1 }
 0x132   :  { %181 = vsyncpa [#allocation6], 1 }
 0x133   :  { %182 = vsyncpa [#allocation4], 1 }

</bundles_post_ra>
